<compile_context>
chip_gen: v7x
topology: tpu7x:2x2x1
jax: 0.10.0
libtpu: 0.0.40
codegen_flags: <defaults>
</compile_context>

<pallas_src>
import functools

import jax
import jax.numpy as jnp
from jax.experimental import pallas as pl
from jax.experimental.pallas import tpu as pltpu


# ----------------------------- Pallas kernel --------------------------------
def cnn_spec_fused_kernel(xcol_ref, weff_ref, bias_ref, mcat_ref, w4cat_ref, o_ref):
    """Fused CNN_Spec forward for one batch block (BB samples packed on lanes).

    xcol_ref : (1, C*H*K, BB*Tspec)   im2col'd input block, lane = bb*Tspec + t
    weff_ref : (D, C*H*K)             fused conv/bn chain weight         (constant)
    bias_ref : (2, D, 1) f32          [0] fused pre-ReLU bias, [1] conv1d bias
    mcat_ref : (3, BB*Tspec, BB*Tout) per-tap block-diag upsample matrices (constant)
    w4cat_ref: (D, 3*D)               conv1d taps [w4[:,:,0]|w4[:,:,1]|w4[:,:,2]]
    o_ref    : (1, D, BB*Tout)        output block, lane = bb*Tout + t
    """
    # Fused temp_freq_conv + bn1 + spatial_conv + bn2 + downsampling + bn3:
    # one matmul, f32 accumulation; squeeze(dim=2) is implicit; ReLU.
    z = jnp.dot(weff_ref[...], xcol_ref[0], preferred_element_type=jnp.float32)
    r = jnp.maximum(z + bias_ref[0], 0.0)                      # f32, stays f32

    # Upsample(linear, align_corners=True) with the conv1d +/-1 tap shifts folded
    # into the three (constant) interpolation matrices. Leading-axis indexing on
    # mcat_ref — no lane slicing; accumulators kept in f32.
    u0 = jnp.dot(r, mcat_ref[0], preferred_element_type=jnp.float32)
    u1 = jnp.dot(r, mcat_ref[1], preferred_element_type=jnp.float32)
    u2 = jnp.dot(r, mcat_ref[2], preferred_element_type=jnp.float32)
    # Each u_k is (D, BB*Tout) = exactly one f32 sublane tile tall -> cheap stack.
    u = jnp.concatenate([u0, u1, u2], axis=0)                  # (3*D, BB*Tout) f32

    # Conv1d(D, D, k=3, padding=1) as a single matmul over the stacked taps.
    out = jnp.dot(w4cat_ref[...], u, preferred_element_type=jnp.float32)
    out = jnp.maximum(out + bias_ref[1], 0.0)                  # final ReLU
    o_ref[0] = out                                             # lane-dense store


# --------------------------- weight fusion (host-side algebra) -----------------
def fuse_params(params, batch_block):
    """Fold the pre-ReLU linear chain + conv1d/upsample layout into fused kernel
    operands. All parameter-only work (kron/pad/stack) is done once, here."""
    (w1, s1, b1, w2, s2, b2, w3, s3, b3, mT, w4, b4) = params
    C, F, H, K = w1.shape
    D = w4.shape[0]
    Tspec, Tout = mT.shape
    BB = batch_block

    # Block-diagonal grouped-conv weight: (C*F, C*H*K).
    w1r = w1.reshape(C, F, H * K)
    w1_block = jnp.einsum('cfj,cd->cfdj', w1r,
                          jnp.eye(C, dtype=w1.dtype)).reshape(C * F, C * H * K)

    # diag(s3) . w3 . diag(s2) . w2 . diag(s1) . W1_block   -> (D, C*H*K)
    chain = s3 * ((w3 * s2.reshape(1, F)) @ (w2 * s1.reshape(1, C * F)))
    w_eff = chain @ w1_block
    # Fused pre-ReLU bias: s3*(w3@(s2*(w2@b1)+b2)) + b3     -> (D, 1)
    b_eff = s3 * (w3 @ (s2 * (w2 @ b1) + b2)) + b3
    bias = jnp.stack([b_eff, b4], axis=0)                     # (2, D, 1), stays f32

    # Conv1d taps, lane-dense LHS: (D, 3*D) = [w4[:,:,0] | w4[:,:,1] | w4[:,:,2]].
    w4cat = w4.transpose(0, 2, 1).reshape(D, 3 * D)

    # Upsample matrices with the conv1d +/-1 tap shifts (zero edges) folded in,
    # block-diagonal over ONE batch block of BB samples: (3, BB*Tspec, BB*Tout).
    m0 = jnp.pad(mT, ((0, 0), (1, 0)))[:, :Tout]              # tap k=0 -> u[:, t-1]
    m2 = jnp.pad(mT, ((0, 0), (0, 1)))[:, 1:]                 # tap k=2 -> u[:, t+1]
    eye_bb = jnp.eye(BB, dtype=jnp.float32)
    mcat3 = jnp.stack([jnp.kron(eye_bb, m) for m in (m0, mT, m2)], axis=0)

    return (w_eff, bias, w4cat, mcat3)


# ------------------------------ wrapper --------------------------------------
@functools.partial(jax.jit,
                   static_argnames=("k_size", "batch_block", "compute_dtype"))
def cnn_spec_forward(x, fused, *, k_size, batch_block=4,
                     compute_dtype=jnp.bfloat16):
    """x: (B, C, H, Tspec) f32 -> (B, D, Tout) f32."""
    (w_eff, bias, w4cat, mcat3) = fused
    B, C, H, Tspec = x.shape
    D, CHK = w_eff.shape
    BB = batch_block
    Tout = mcat3.shape[-1] // BB
    K = k_size
    pad = K // 2

    # Pad batch to a multiple of the batch block; each grid step packs BB samples
    # on the lane axis so every output block is (D, BB*Tout) lane-dense (>=128).
    NB = pl.cdiv(B, BB)
    Bp = NB * BB
    if Bp != B:
        x = jnp.pad(x, ((0, Bp - B), (0, 0), (0, 0), (0, 0)))

    # im2col: (NB, C*H*K, BB*Tspec), lane (within a block) = bb*Tspec + t.
    xp = jnp.pad(x, ((0, 0), (0, 0), (0, 0), (pad, pad)))
    cols = jnp.stack([xp[..., k:k + Tspec] for k in range(K)], axis=3)  # (Bp,C,H,K,T)
    xcol = (cols.reshape(Bp, CHK, Tspec)
                .reshape(NB, BB, CHK, Tspec)
                .transpose(0, 2, 1, 3)
                .reshape(NB, CHK, BB * Tspec))

    cd = compute_dtype        # bf16 default: MXU-native and halves input DMA bytes.
    BTs, BTo = BB * Tspec, BB * Tout
    isz = jnp.dtype(cd).itemsize

    flops = 2 * NB * (D * CHK * BTs + 3 * D * BTs * BTo + D * (3 * D) * BTo)
    bytes_accessed = ((NB * CHK * BTs + D * CHK + 3 * BTs * BTo + D * 3 * D) * isz
                      + 2 * D * 4 + NB * D * BTo * 4)

    out = pl.pallas_call(
        cnn_spec_fused_kernel,
        out_shape=jax.ShapeDtypeStruct((NB, D, BTo), jnp.float32),
        grid=(NB,),
        in_specs=[
            pl.BlockSpec((1, CHK, BTs), lambda i: (i, 0, 0)),   # per-block input
            pl.BlockSpec((D, CHK), lambda i: (0, 0)),           # constants: block
            pl.BlockSpec((2, D, 1), lambda i: (0, 0, 0)),       #   index unchanged
            pl.BlockSpec((3, BTs, BTo), lambda i: (0, 0, 0)),   #   across steps ->
            pl.BlockSpec((D, 3 * D), lambda i: (0, 0)),         #   fetched once
        ],
        out_specs=pl.BlockSpec((1, D, BTo), lambda i: (i, 0, 0)),
        compiler_params=pltpu.CompilerParams(
            dimension_semantics=("parallel",),      # v7x: shard blocks over 2 TCs
            vmem_limit_bytes=32 * 1024 * 1024),
        cost_estimate=pl.CostEstimate(flops=flops, transcendentals=0,
                                      bytes_accessed=bytes_accessed),
    )(xcol.astype(cd), w_eff.astype(cd), bias, mcat3.astype(cd), w4cat.astype(cd))

    # (NB, D, BB*Tout) -> (B, D, Tout), matching torch's Conv1d output layout.
    out = (out.reshape(NB, D, BB, Tout)
              .transpose(0, 2, 1, 3)
              .reshape(Bp, D, Tout))
    return out[:B]


# --------------------------- parameter setup ----------------------------------
def linear_upsample_matrix_T(L_in, L_out):
    """Interpolation matrix^T for Upsample(mode='linear', align_corners=True)."""
    j = jnp.arange(L_out)
    src = j * (L_in - 1) / (L_out - 1)
    i0 = jnp.clip(jnp.floor(src).astype(jnp.int32), 0, L_in - 1)
    i1 = jnp.minimum(i0 + 1, L_in - 1)
    w = src - i0.astype(src.dtype)
    M = jnp.zeros((L_out, L_in), jnp.float32)
    M = M.at[j, i0].add((1.0 - w).astype(jnp.float32))
    M = M.at[j, i1].add(w.astype(jnp.float32))
    return M.T                                           # (L_in, L_out)


def make_bn_affine(key, n, eps=1e-5):
    k1, k2, k3, k4 = jax.random.split(key, 4)
    gamma = 1.0 + 0.1 * jax.random.normal(k1, (n,), jnp.float32)
    beta = 0.1 * jax.random.normal(k2, (n,), jnp.float32)
    mean = 0.1 * jax.random.normal(k3, (n,), jnp.float32)
    var = 0.5 + jax.random.uniform(k4, (n,), jnp.float32)
    scale = gamma / jnp.sqrt(var + eps)
    bias = beta - mean * scale
    return scale.reshape(n, 1), bias.reshape(n, 1)


def make_params(key, C, F, H, K, D, Tspec, Tout):
    ks = jax.random.split(key, 8)
    w1 = 0.2 * jax.random.normal(ks[0], (C, F, H, K), jnp.float32)
    w2 = 0.2 * jax.random.normal(ks[1], (F, C * F), jnp.float32)
    w3 = 0.3 * jax.random.normal(ks[2], (D, F), jnp.float32)
    w4 = 0.3 * jax.random.normal(ks[3], (D, D, 3), jnp.float32)
    b4 = 0.1 * jax.random.normal(ks[4], (D, 1), jnp.float32)
    s1, b1 = make_bn_affine(ks[5], C * F)
    s2, b2 = make_bn_affine(ks[6], F)
    s3, b3 = make_bn_affine(ks[7], D)
    mT = linear_upsample_matrix_T(Tspec, Tout)
    return (w1, s1, b1, w2, s2, b2, w3, s3, b3, mT, w4, b4)


# --------------------------- plain-JAX reference -------------------------------
def reference(x, params, pad):
    (w1, s1, b1, w2, s2, b2, w3, s3, b3, mT, w4, b4) = params
    B, C, H, Tspec = x.shape
    _, F, _, K = w1.shape
    hi = jax.lax.Precision.HIGHEST
    xp = jnp.pad(x, ((0, 0), (0, 0), (0, 0), (pad, pad)))
    win = jnp.stack([xp[..., k:k + Tspec] for k in range(K)], axis=-1)  # (B,C,H,T,K)
    y = jnp.einsum('bchtk,cfhk->bcft', win, w1, precision=hi).reshape(B, C * F, Tspec)
    y = y * s1 + b1
    y = jnp.einsum('gc,bct->bgt', w2, y, precision=hi) * s2 + b2
    y = jnp.einsum('dg,bgt->bdt', w3, y, precision=hi) * s3 + b3
    y = jnp.maximum(y, 0.0)
    y = jnp.einsum('bdt,tu->bdu', y, mT, precision=hi)
    Tout = y.shape[-1]
    yp = jnp.pad(y, ((0, 0), (0, 0), (1, 1)))
    out = b4[None]
    for k in range(3):
        out = out + jnp.einsum('de,bet->bdt', w4[:, :, k], yp[:, :, k:k + Tout],
                               precision=hi)
    return jnp.maximum(out, 0.0)


# ------------------------------- main ------------------------------------------
if __name__ == "__main__":
    # Config consistent with CNN_Spec.__init__:
    #   spec_shape=(n_freq=8, n_spec_time=16), n_time_samples=32,
    #   n_channels=4, n_temporal_filters=8, combine_with_temporal=True -> D=8,
    #   temporal_filter_length = int(16*0.5)=8 -> made odd -> 7, padding 3.
    # B=8 with batch_block=4 gives a 2-step parallel grid, each output block
    # lane-dense at BB*Tout = 128 lanes.
    B, C, H, Tspec = 8, 4, 8, 16
    F = 8                       # n_temporal_filters
    D = F                       # downsample_size (combine_with_temporal=True)
    Tout = 32                   # n_time_samples
    K = 7                       # odd temporal filter length
    BB = 4                      # batch block -> BB*Tout = 128 lanes per block

    key = jax.random.PRNGKey(0)
    kx, kp = jax.random.split(key)
    x = jax.random.normal(kx, (B, C, H, Tspec), jnp.float32)
    params = make_params(kp, C, F, H, K, D, Tspec, Tout)
    fused = fuse_params(params, batch_block=BB)

    ref = reference(x, params, K // 2)
    ref_scale = float(jnp.max(jnp.abs(ref))) + 1e-12

    # f32 operands.
    out_f32 = cnn_spec_forward(x, fused, k_size=K, batch_block=BB,
                               compute_dtype=jnp.float32)
    out_f32 = jax.block_until_ready(out_f32)
    assert out_f32.shape == (B, D, Tout), out_f32.shape
    err = float(jnp.max(jnp.abs(out_f32 - ref))) / ref_scale
    assert err < 2e-2, err

    # bf16 operands (default; MXU-native), all accumulators kept f32 in-kernel.
    out_bf16 = cnn_spec_forward(x, fused, k_size=K, batch_block=BB)
    out_bf16 = jax.block_until_ready(out_bf16)
    err_bf16 = float(jnp.max(jnp.abs(out_bf16 - ref))) / ref_scale
    assert err_bf16 < 5e-2, err_bf16

    print("KERNEL_OK")
</pallas_src>

<mosaic_0001>
module attributes {stable_mosaic.version = 11 : i64} {
  func.func @cnn_spec_fused_kernel(%arg0: i32, %arg1: memref<1x224x64xf32, #tpu.memory_space<vmem>>, %arg2: memref<8x224xf32, #tpu.memory_space<vmem>>, %arg3: memref<2x8x1xf32, #tpu.memory_space<vmem>>, %arg4: memref<3x64x128xf32, #tpu.memory_space<vmem>>, %arg5: memref<8x24xf32, #tpu.memory_space<vmem>>, %arg6: memref<1x8x128xf32, #tpu.memory_space<vmem>>) attributes {dimension_semantics = [#tpu.dimension_semantics<parallel>], iteration_bounds = array<i64: 2>, scalar_prefetch = 0 : i64, scratch_operands = 0 : i64, tpu.core_type = #tpu.core_type<tc>, window_params = [{transform_indices = @transform_0, window_bounds = array<i64: 1, 224, 64>}, {pipeline_mode = #tpu.pipeline_mode<synchronous>, transform_indices = @transform_1, window_bounds = array<i64: 8, 224>}, {pipeline_mode = #tpu.pipeline_mode<synchronous>, transform_indices = @transform_2, window_bounds = array<i64: 2, 8, 1>}, {pipeline_mode = #tpu.pipeline_mode<synchronous>, transform_indices = @transform_3, window_bounds = array<i64: 3, 64, 128>}, {pipeline_mode = #tpu.pipeline_mode<synchronous>, transform_indices = @transform_4, window_bounds = array<i64: 8, 24>}, {transform_indices = @transform_5, window_bounds = array<i64: 1, 8, 128>}]} {
    %c0 = arith.constant 0 : index
    %c0_0 = arith.constant 0 : index
    %0 = vector.load %arg2[%c0, %c0_0] : memref<8x224xf32, #tpu.memory_space<vmem>>, vector<8x224xf32>
    %c0_1 = arith.constant 0 : index
    %c0_2 = arith.constant 0 : index
    %c0_3 = arith.constant 0 : index
    %1 = vector.load %arg1[%c0_1, %c0_2, %c0_3] : memref<1x224x64xf32, #tpu.memory_space<vmem>>, vector<1x224x64xf32>
    %2 = vector.shape_cast %1 : vector<1x224x64xf32> to vector<224x64xf32>
    %cst = arith.constant dense<0.000000e+00> : vector<8x64xf32>
    %3 = tpu.matmul %0, %2, %cst {dimension_numbers = #tpu.dot_dimension_numbers<[1], [0], [0], [1], [0, 0, 1, 1], [], []>} : vector<8x224xf32>, vector<224x64xf32>, vector<8x64xf32> -> vector<8x64xf32>
    %c0_4 = arith.constant 0 : index
    %c0_5 = arith.constant 0 : index
    %c0_6 = arith.constant 0 : index
    %4 = vector.load %arg3[%c0_4, %c0_5, %c0_6] : memref<2x8x1xf32, #tpu.memory_space<vmem>>, vector<1x8x1xf32>
    %5 = vector.shape_cast %4 : vector<1x8x1xf32> to vector<8x1xf32>
    %6 = vector.broadcast %5 : vector<8x1xf32> to vector<8x64xf32>
    %7 = arith.addf %3, %6 : vector<8x64xf32>
    %cst_7 = arith.constant 0.000000e+00 : f32
    %8 = vector.broadcast %cst_7 : f32 to vector<8x64xf32>
    %9 = arith.maximumf %7, %8 : vector<8x64xf32>
    %c0_8 = arith.constant 0 : index
    %c0_9 = arith.constant 0 : index
    %c0_10 = arith.constant 0 : index
    %10 = vector.load %arg4[%c0_8, %c0_9, %c0_10] : memref<3x64x128xf32, #tpu.memory_space<vmem>>, vector<1x64x128xf32>
    %11 = vector.shape_cast %10 : vector<1x64x128xf32> to vector<64x128xf32>
    %cst_11 = arith.constant dense<0.000000e+00> : vector<8x128xf32>
    %12 = tpu.matmul %9, %11, %cst_11 {dimension_numbers = #tpu.dot_dimension_numbers<[1], [0], [0], [1], [0, 0, 1, 1], [], []>} : vector<8x64xf32>, vector<64x128xf32>, vector<8x128xf32> -> vector<8x128xf32>
    %c1 = arith.constant 1 : index
    %c0_12 = arith.constant 0 : index
    %c0_13 = arith.constant 0 : index
    %13 = vector.load %arg4[%c1, %c0_12, %c0_13] : memref<3x64x128xf32, #tpu.memory_space<vmem>>, vector<1x64x128xf32>
    %14 = vector.shape_cast %13 : vector<1x64x128xf32> to vector<64x128xf32>
    %cst_14 = arith.constant dense<0.000000e+00> : vector<8x128xf32>
    %15 = tpu.matmul %9, %14, %cst_14 {dimension_numbers = #tpu.dot_dimension_numbers<[1], [0], [0], [1], [0, 0, 1, 1], [], []>} : vector<8x64xf32>, vector<64x128xf32>, vector<8x128xf32> -> vector<8x128xf32>
    %c2 = arith.constant 2 : index
    %c0_15 = arith.constant 0 : index
    %c0_16 = arith.constant 0 : index
    %16 = vector.load %arg4[%c2, %c0_15, %c0_16] : memref<3x64x128xf32, #tpu.memory_space<vmem>>, vector<1x64x128xf32>
    %17 = vector.shape_cast %16 : vector<1x64x128xf32> to vector<64x128xf32>
    %cst_17 = arith.constant dense<0.000000e+00> : vector<8x128xf32>
    %18 = tpu.matmul %9, %17, %cst_17 {dimension_numbers = #tpu.dot_dimension_numbers<[1], [0], [0], [1], [0, 0, 1, 1], [], []>} : vector<8x64xf32>, vector<64x128xf32>, vector<8x128xf32> -> vector<8x128xf32>
    %19 = tpu.concatenate %12, %15, %18 in 0 : vector<8x128xf32>, vector<8x128xf32>, vector<8x128xf32> -> vector<24x128xf32>
    %c0_18 = arith.constant 0 : index
    %c0_19 = arith.constant 0 : index
    %20 = vector.load %arg5[%c0_18, %c0_19] : memref<8x24xf32, #tpu.memory_space<vmem>>, vector<8x24xf32>
    %cst_20 = arith.constant dense<0.000000e+00> : vector<8x128xf32>
    %21 = tpu.matmul %20, %19, %cst_20 {dimension_numbers = #tpu.dot_dimension_numbers<[1], [0], [0], [1], [0, 0, 1, 1], [], []>} : vector<8x24xf32>, vector<24x128xf32>, vector<8x128xf32> -> vector<8x128xf32>
    %c1_21 = arith.constant 1 : index
    %c0_22 = arith.constant 0 : index
    %c0_23 = arith.constant 0 : index
    %22 = vector.load %arg3[%c1_21, %c0_22, %c0_23] : memref<2x8x1xf32, #tpu.memory_space<vmem>>, vector<1x8x1xf32>
    %23 = vector.shape_cast %22 : vector<1x8x1xf32> to vector<8x1xf32>
    %24 = vector.broadcast %23 : vector<8x1xf32> to vector<8x128xf32>
    %25 = arith.addf %21, %24 : vector<8x128xf32>
    %cst_24 = arith.constant 0.000000e+00 : f32
    %26 = vector.broadcast %cst_24 : f32 to vector<8x128xf32>
    %27 = arith.maximumf %25, %26 : vector<8x128xf32>
    %c0_25 = arith.constant 0 : index
    %c0_26 = arith.constant 0 : index
    %c0_27 = arith.constant 0 : index
    %28 = vector.load %arg6[%c0_25, %c0_26, %c0_27] : memref<1x8x128xf32, #tpu.memory_space<vmem>>, vector<1x8x128xf32>
    %29 = vector.shape_cast %28 : vector<1x8x128xf32> to vector<8x128xf32>
    %30 = vector.shape_cast %27 : vector<8x128xf32> to vector<1x8x128xf32>
    tpu.vector_store %arg6[%c0_25, %c0_26, %c0_27], %30 {strides = array<i32>} : memref<1x8x128xf32, #tpu.memory_space<vmem>>, vector<1x8x128xf32>,
    return
  }
  func.func @transform_0(%arg0: i32) -> (i32, i32, i32) {
    %c0_i32 = arith.constant 0 : i32
    %c0_i32_0 = arith.constant 0 : i32
    %c0_i32_1 = arith.constant 0 : i32
    return %arg0, %c0_i32, %c0_i32_0 : i32, i32, i32
  }
  func.func @transform_1(%arg0: i32) -> (i32, i32) {
    %c0_i32 = arith.constant 0 : i32
    %c0_i32_0 = arith.constant 0 : i32
    %c0_i32_1 = arith.constant 0 : i32
    return %c0_i32, %c0_i32_0 : i32, i32
  }
  func.func @transform_2(%arg0: i32) -> (i32, i32, i32) {
    %c0_i32 = arith.constant 0 : i32
    %c0_i32_0 = arith.constant 0 : i32
    %c0_i32_1 = arith.constant 0 : i32
    %c0_i32_2 = arith.constant 0 : i32
    return %c0_i32, %c0_i32_0, %c0_i32_1 : i32, i32, i32
  }
  func.func @transform_3(%arg0: i32) -> (i32, i32, i32) {
    %c0_i32 = arith.constant 0 : i32
    %c0_i32_0 = arith.constant 0 : i32
    %c0_i32_1 = arith.constant 0 : i32
    %c0_i32_2 = arith.constant 0 : i32
    return %c0_i32, %c0_i32_0, %c0_i32_1 : i32, i32, i32
  }
  func.func @transform_4(%arg0: i32) -> (i32, i32) {
    %c0_i32 = arith.constant 0 : i32
    %c0_i32_0 = arith.constant 0 : i32
    %c0_i32_1 = arith.constant 0 : i32
    return %c0_i32, %c0_i32_0 : i32, i32
  }
  func.func @transform_5(%arg0: i32) -> (i32, i32, i32) {
    %c0_i32 = arith.constant 0 : i32
    %c0_i32_0 = arith.constant 0 : i32
    %c0_i32_1 = arith.constant 0 : i32
    return %arg0, %c0_i32, %c0_i32_0 : i32, i32, i32
  }
}

</mosaic_0001>

<bundles_post_ra>
// kernel: cnn_spec_forward.1
= control target key start
LH: loop header
LB: loop body
LE: loop exit
PB: predicated region body
PF: predicated region fallthrough
CT: control target
= control target key end

     0   :  { %s976_s18 = smov 0   ;;  %s1148_s0 = inlined_call_operand.vmem [shape: f32[2,224,64], index: 0, kind: input, shape index: {}]   ;;  %s1149_s1 = inlined_call_operand.vmem [shape: f32[8,224], index: 1, kind: input, shape index: {}]   ;;  %s1150_s2 = inlined_call_operand.vmem [shape: f32[2,8,1], index: 2, kind: input, shape index: {}]   ;;  %s1151_s3 = inlined_call_operand.vmem [shape: f32[3,64,128], index: 3, kind: input, shape index: {}]   ;;  %s1152_s4 = inlined_call_operand.vmem [shape: f32[8,24], index: 4, kind: input, shape index: {}]   ;;  %s1153_s5 = inlined_call_operand.vmem [shape: f32[2,8,128], index: 5, kind: output, shape index: {}]  }
   0x1 LB: > { %s711_s19 = sadd.s32 4294967295, %s940_s18   ;;  %p715_p0 = scmp.ge.s32.totalorder %s940_s18, 1  ;;  %s940_s18 = sphi %s976_s18, %s15_s18  }
   0x2   : > { %p187_p1 = scmp.lt.s32.totalorder %s940_s18, 3 }
   0x4   : > { %p188_p2 = pnand %p715_p0, %p187_p1 }
   0x5   : > { %p214_p3 = scmp.lt.s32.totalorder (!%p188_p2), %s711_s19, 1  ;;  %v224_v0 = vld [vmem:[%s1149_s1 + $0x8] sm:$0xff] (!%p188_p2)  ;;  %vm259_vm0 = vcmask (!%p188_p2), 785408   ;;  %v942_v1 = vmov (!%p188_p2), 0.0|0.0   ;;  %v253_v2 = vld [vmem:[%s1150_s2] sm:$0xff] (!%p188_p2)  ;;  %v943_v4 = vmov (!%p188_p2), 0  }
   0x6   : > { %191 = sbr.rel (%p188_p2) target bundleno = 753 (0x2f1), region = 40  ;;  %839 = vmatprep.subr.bf16.mxu0 (!%p188_p2), %v942_v1  ;;  %718 = vmatprep.mubr.msk.f32.mxu0 (!%p188_p2), %vm259_vm0, %v224_v0  ;;  %v334_v3 = vld [vmem:[%s1151_s3] sm:$0xff] (!%p188_p2)  ;;  %v335_v5 = vld [vmem:[%s1151_s3 + $0x8] sm:$0xff] (!%p188_p2)  ;;  %v336_v6 = vld [vmem:[%s1151_s3 + $0x10] sm:$0xff] (!%p188_p2)  ;;  %vm944_vm1 = vmmov (!%p188_p2), 0   ;;  %v945_v60 = vmov (!%p188_p2), 0.0  }
   0x7   : > { %933 = vset.pattern.permute.xlu0 (!%p188_p2), %v943_v4  ;;  %881 = vmatprep.subr.bf16.mxu1 (!%p188_p2), %v942_v1  ;;  %v337_v7 = vld [vmem:[%s1151_s3 + $0x18] sm:$0xff] (!%p188_p2)  ;;  %v882_v8 = vpack.c.bf16 (!%p188_p2), %v335_v5, %v334_v3  ;;  %v738_v9 = vld [vmem:[%s1150_s2 + $0x8] sm:$0xff] (!%p188_p2)  ;;  %v338_v11 = vld [vmem:[%s1151_s3 + $0x20] sm:$0xff] (!%p188_p2)  ;;  %vm342_vm2 = vcmask (!%p188_p2), 523264   ;;  %vm582_vm3 = vcmask (!%p188_p2), 195584  }
   0x8   : > { %256 = vperm.xlu0 (!%p188_p2), %933, %v253_v2   ;;  %v885_v10 = vpack.c.bf16 (!%p188_p2), %v337_v7, %v336_v6  ;;  %v339_v12 = vld [vmem:[%s1151_s3 + $0x28] sm:$0xff] (!%p188_p2)  ;;  %v223_v56 = vld [vmem:[%s1149_s1] sm:$0xff] (!%p188_p2)  ;;  %v340_v57 = vld [vmem:[%s1151_s3 + $0x30] sm:$0xff] (!%p188_p2)  ;;  %789 = vmatprep.mubr.msk.f32.mxu1 (!%p188_p2), %vm944_vm1, %v945_v60 }
   0x9   : > { %883 = vmatpush3.bf16.msra.mxu1 (!%p188_p2), %v882_v8  ;;  %v888_v18 = vpack.c.bf16 (!%p188_p2), %v339_v12, %v338_v11  ;;  %v341_v58 = vld [vmem:[%s1151_s3 + $0x38] sm:$0xff] (!%p188_p2)  ;;  %v720_v61 = vld [vmem:[%s1151_s3 + $0x40] sm:$0xff] (!%p188_p2)  ;;  %v721_v62 = vld [vmem:[%s1151_s3 + $0x48] sm:$0xff] (!%p188_p2) }
   0xa   : > { %884 = vmatprep.subr.bf16.mxu1 (!%p188_p2), %v942_v1  ;;  %v891_v59 = vpack.c.bf16 (!%p188_p2), %v341_v58, %v340_v57  ;;  %v894_v4 = vpack.c.bf16 (!%p188_p2), %v721_v62, %v720_v61  ;;  %v722_v6 = vld [vmem:[%s1151_s3 + $0x50] sm:$0xff] (!%p188_p2)  ;;  %v723_v7 = vld [vmem:[%s1151_s3 + $0x58] sm:$0xff] (!%p188_p2) }
   0xb   : > { %v897_v8 = vpack.c.bf16 (!%p188_p2), %v723_v7, %v722_v6  ;;  %v726_v12 = vld [vmem:[%s1151_s3 + $0x70] sm:$0xff] (!%p188_p2) }
   0xc   : > { %579 = vperm.xlu0 (!%p188_p2), %933, %v738_v9   ;;  %v724_v9 = vld [vmem:[%s1151_s3 + $0x60] sm:$0xff] (!%p188_p2) }
   0xd   : > { %s1155_s19 = smov (!%p214_p3, %s711_s19), 1  ;;  %886 = vmatpush3.bf16.msra.mxu1 %v885_v10  ;;  %v725_v10 = vld [vmem:[%s1151_s3 + $0x68] sm:$0xff] }
   0xe   : > { %s920_s7 = smul.u32 224, %s1155_s19  ;;  %887 = vmatprep.subr.bf16.mxu1 %v942_v1  ;;  %v900_v11 = vpack.c.bf16 %v725_v10, %v724_v9  ;;  %s717_s11 = sshll.u32 %s1155_s19, 3 }
   0xf   : > { %s222_s14 = scalar_lea.vmem %s1153_s5, %s717_s11 }
  0x10   : > { %s1013_s12 = scalar_lea.vmem %s1148_s0, %s920_s7 }
  0x11   : > { %v225_v13 = vld [vmem:[%s1013_s12] sm:$0xff]  ;;  %v226_v14 = vld [vmem:[%s1013_s12 + $0x8] sm:$0xff]  ;;  %v227_v15 = vld [vmem:[%s1013_s12 + $0x10] sm:$0xff]  ;;  %889 = vmatpush3.bf16.msra.mxu1 %v888_v18 }
  0x12   : > { %v840_v16 = vpack.c.bf16 %v226_v14, %v225_v13  ;;  %v228_v17 = vld [vmem:[%s1013_s12 + $0x18] sm:$0xff]  ;;  %v229_v20 = vld [vmem:[%s1013_s12 + $0x20] sm:$0xff]  ;;  %v230_v21 = vld [vmem:[%s1013_s12 + $0x28] sm:$0xff]  ;;  %890 = vmatprep.subr.bf16.mxu1 %v942_v1 }
  0x13   : > { %v843_v19 = vpack.c.bf16 %v228_v17, %v227_v15  ;;  %v846_v22 = vpack.c.bf16 %v230_v21, %v229_v20  ;;  %v231_v23 = vld [vmem:[%s1013_s12 + $0x30] sm:$0xff]  ;;  %v232_v24 = vld [vmem:[%s1013_s12 + $0x38] sm:$0xff]  ;;  %v233_v26 = vld [vmem:[%s1013_s12 + $0x40] sm:$0xff] }
  0x14   : > { %841 = vmatpush1.bf16.msra.mxu0 %v840_v16  ;;  %v849_v25 = vpack.c.bf16 %v232_v24, %v231_v23  ;;  %v234_v27 = vld [vmem:[%s1013_s12 + $0x48] sm:$0xff]  ;;  %v235_v29 = vld [vmem:[%s1013_s12 + $0x50] sm:$0xff]  ;;  %v236_v30 = vld [vmem:[%s1013_s12 + $0x58] sm:$0xff] }
  0x15   : > { %842 = vmatprep.subr.bf16.mxu0 %v942_v1  ;;  %v852_v28 = vpack.c.bf16 %v234_v27, %v233_v26  ;;  %v855_v31 = vpack.c.bf16 %v236_v30, %v235_v29  ;;  %v237_v32 = vld [vmem:[%s1013_s12 + $0x60] sm:$0xff]  ;;  %v238_v33 = vld [vmem:[%s1013_s12 + $0x68] sm:$0xff]  ;;  %v239_v35 = vld [vmem:[%s1013_s12 + $0x70] sm:$0xff]  ;;  %892 = vmatpush3.bf16.msra.mxu1 %v891_v59 }
  0x16   : > { %v858_v34 = vpack.c.bf16 %v238_v33, %v237_v32  ;;  %v240_v36 = vld [vmem:[%s1013_s12 + $0x78] sm:$0xff]  ;;  %v241_v38 = vld [vmem:[%s1013_s12 + $0x80] sm:$0xff]  ;;  %v242_v39 = vld [vmem:[%s1013_s12 + $0x88] sm:$0xff]  ;;  %893 = vmatprep.subr.bf16.mxu1 %v942_v1 }
  0x17   : > { %v861_v37 = vpack.c.bf16 %v240_v36, %v239_v35  ;;  %v864_v40 = vpack.c.bf16 %v242_v39, %v241_v38  ;;  %v243_v41 = vld [vmem:[%s1013_s12 + $0x90] sm:$0xff]  ;;  %v244_v42 = vld [vmem:[%s1013_s12 + $0x98] sm:$0xff]  ;;  %v245_v44 = vld [vmem:[%s1013_s12 + $0xa0] sm:$0xff] }
  0x18   : > { %844 = vmatpush1.bf16.msra.mxu0 %v843_v19  ;;  %v867_v43 = vpack.c.bf16 %v244_v42, %v243_v41  ;;  %v246_v45 = vld [vmem:[%s1013_s12 + $0xa8] sm:$0xff]  ;;  %v247_v47 = vld [vmem:[%s1013_s12 + $0xb0] sm:$0xff]  ;;  %v248_v48 = vld [vmem:[%s1013_s12 + $0xb8] sm:$0xff] }
  0x19   : > { %845 = vmatprep.subr.bf16.mxu0 %v942_v1  ;;  %v870_v46 = vpack.c.bf16 %v246_v45, %v245_v44  ;;  %v873_v49 = vpack.c.bf16 %v248_v48, %v247_v47  ;;  %v249_v50 = vld [vmem:[%s1013_s12 + $0xc0] sm:$0xff]  ;;  %v250_v51 = vld [vmem:[%s1013_s12 + $0xc8] sm:$0xff]  ;;  %v251_v53 = vld [vmem:[%s1013_s12 + $0xd0] sm:$0xff] }
  0x1a   : > { %v876_v52 = vpack.c.bf16 %v250_v51, %v249_v50  ;;  %v252_v54 = vld [vmem:[%s1013_s12 + $0xd8] sm:$0xff]  ;;  %v729_v15 = vld [vmem:[%s1151_s3 + $0x80] sm:$0xff]  ;;  %v730_v16 = vld [vmem:[%s1151_s3 + $0x88] sm:$0xff] }
  0x1b   : > { %v879_v55 = vpack.c.bf16 %v252_v54, %v251_v53  ;;  %v727_v13 = vld [vmem:[%s1151_s3 + $0x78] sm:$0xff]  ;;  %v906_v17 = vpack.c.bf16 %v730_v16, %v729_v15  ;;  %v731_v18 = vld [vmem:[%s1151_s3 + $0x90] sm:$0xff]  ;;  %v733_v21 = vld [vmem:[%s1151_s3 + $0xa0] sm:$0xff] }
  0x1c   : > { %847 = vmatpush1.bf16.msra.mxu0 %v846_v22  ;;  %v903_v14 = vpack.c.bf16 %v727_v13, %v726_v12  ;;  %v732_v19 = vld [vmem:[%s1151_s3 + $0x98] sm:$0xff]  ;;  %v734_v22 = vld [vmem:[%s1151_s3 + $0xa8] sm:$0xff]  ;;  %v735_v24 = vld [vmem:[%s1151_s3 + $0xb0] sm:$0xff] }
  0x1d   : > { %848 = vmatprep.subr.bf16.mxu0 %v942_v1  ;;  %v909_v20 = vpack.c.bf16 %v732_v19, %v731_v18  ;;  %v912_v23 = vpack.c.bf16 %v734_v22, %v733_v21  ;;  %v574_v32 = vld [vmem:[%s1152_s4] sm:$0xff] }
  0x20   : > { %850 = vmatpush1.bf16.msra.mxu0 %v849_v25  ;;  %v736_v25 = vld [vmem:[%s1151_s3 + $0xb8] sm:$0xff] }
  0x21   : > { %851 = vmatprep.subr.bf16.mxu0 %v942_v1  ;;  %v915_v26 = vpack.c.bf16 %v736_v25, %v735_v24 }
  0x24   : > { %853 = vmatpush1.bf16.msra.mxu0 %v852_v28 }
  0x25   : > { %854 = vmatprep.subr.bf16.mxu0 %v942_v1 }
  0x28   : > { %856 = vmatpush1.bf16.msra.mxu0 %v855_v31 }
  0x29   : > { %857 = vmatprep.subr.bf16.mxu0 %v942_v1 }
  0x2c   : > { %859 = vmatpush1.bf16.msra.mxu0 %v858_v34 }
  0x2d   : > { %860 = vmatprep.subr.bf16.mxu0 %v942_v1 }
  0x30   : > { %862 = vmatpush1.bf16.msra.mxu0 %v861_v37 }
  0x31   : > { %863 = vmatprep.subr.bf16.mxu0 %v942_v1 }
  0x34   : > { %865 = vmatpush1.bf16.msra.mxu0 %v864_v40 }
  0x35   : > { %866 = vmatprep.subr.bf16.mxu0 %v942_v1 }
  0x38   : > { %868 = vmatpush1.bf16.msra.mxu0 %v867_v43 }
  0x39   : > { %869 = vmatprep.subr.bf16.mxu0 %v942_v1 }
  0x3c   : > { %871 = vmatpush1.bf16.msra.mxu0 %v870_v46 }
  0x3d   : > { %872 = vmatprep.subr.bf16.mxu0 %v942_v1 }
  0x40   : > { %874 = vmatpush1.bf16.msra.mxu0 %v873_v49 }
  0x41   : > { %875 = vmatprep.subr.bf16.mxu0 %v942_v1 }
  0x44   : > { %877 = vmatpush1.bf16.msra.mxu0 %v876_v52 }
  0x45   : > { %878 = vmatprep.subr.bf16.mxu0 %v942_v1 }
  0x48   : > { %880 = vmatpush1.bf16.msra.mxu0 %v879_v55 }
  0x4b   : > { %328 = vmatmul.mubr.f32.vlgmr.msra.gmra.mrb[0].mxu0 %v223_v56 }
  0x87   : > { %v257_v63 = vpop.permute.xlu0 %256 }
 0x11e   : > { %v329_v0 = vpop.f32.mrb[0].mxu0 }
 0x11f   : > { %v330_v2 = vadd.f32 %v329_v0, %v257_v63  ;;  %v331_v3 = vpop.f32.mrb[1].mxu0 }
 0x121   : > { %v333_v5 = vmax.f32 %v330_v2, 0.0 }
 0x123   : > { %790 = vmatmul.mubr.msk.f32.vlgmr.msra.gmra.mrb[0].mxu1 %vm342_vm2, %v333_v5 }
 0x124   : > { %895 = vmatpush3.bf16.msra.mxu1 %v894_v4  ;;  %808 = vmatprep.mubr.msk.f32.mxu1 %vm944_vm1, %v945_v60 }
 0x125   : > { %896 = vmatprep.subr.bf16.mxu1 %v942_v1 }
 0x128   : > { %898 = vmatpush3.bf16.msra.mxu1 %v897_v8 }
 0x129   : > { %899 = vmatprep.subr.bf16.mxu1 %v942_v1 }
 0x12c   : > { %901 = vmatpush3.bf16.msra.mxu1 %v900_v11 }
 0x12d   : > { %902 = vmatprep.subr.bf16.mxu1 %v942_v1 }
 0x130   : > { %904 = vmatpush3.bf16.msra.mxu1 %v903_v14 }
 0x131   : > { %905 = vmatprep.subr.bf16.mxu1 %v942_v1 }
 0x133   : > { %809 = vmatmul.mubr.msk.f32.vlgmr.msra.gmra.mrb[2].mxu1 %vm342_vm2, %v333_v5 }
 0x134   : > { %907 = vmatpush3.bf16.msra.mxu1 %v906_v17  ;;  %827 = vmatprep.mubr.msk.f32.mxu1 %vm944_vm1, %v945_v60 }
 0x135   : > { %908 = vmatprep.subr.bf16.mxu1 %v942_v1 }
 0x138   : > { %910 = vmatpush3.bf16.msra.mxu1 %v909_v20 }
 0x139   : > { %911 = vmatprep.subr.bf16.mxu1 %v942_v1 }
 0x13c   : > { %913 = vmatpush3.bf16.msra.mxu1 %v912_v23 }
 0x13d   : > { %914 = vmatprep.subr.bf16.mxu1 %v942_v1 }
 0x140   : > { %916 = vmatpush3.bf16.msra.mxu1 %v915_v26 }
 0x141   : > { %917 = vmatprep.subr.bf16.mxu1 %v942_v1  ;;  %v580_v1 = vpop.permute.xlu0 %579 }
 0x143   : > { %828 = vmatmul.mubr.msk.f32.vlgmr.msra.gmra.mrb[4].mxu1 %vm342_vm2, %v333_v5 }
 0x144   : > { %836 = vmatprep.mubr.msk.f32.mxu1 %vm944_vm1, %v945_v60 }
 0x1f6   : > { %v412_v27 = vpop.f32.mrb[0].mxu1 }
 0x1f7   : > { %v791_v28 = vpop.f32.mrb[1].mxu1 }
 0x206   : > { %v491_v29 = vpop.f32.mrb[2].mxu1 }
 0x207   : > { %v918_v30 = vpack.c.bf16 %v491_v29, %v412_v27  ;;  %v810_v31 = vpop.f32.mrb[3].mxu1 }
 0x209   : > { %919 = vmatpush3.bf16.msra.mxu1 %v918_v30 }
 0x20a   : > { %834 = vmatprep.subr.mxu1 %v945_v60 }
 0x216   : > { %v570_v33 = vpop.f32.mrb[4].mxu1 }
 0x217   : > { %v829_v34 = vpop.f32.mrb[5].mxu1  ;;  %835 = vmatpush3.msra.mxu1 %v570_v33 }
 0x218   : > { %837 = vmatmul.mubr.msk.f32.vlgmr.msra.gmra.mrb[6].mxu1 %vm582_vm3, %v574_v32 }
 0x2eb   : > { %v652_v35 = vpop.f32.mrb[6].mxu1 }
 0x2ec   : > { %v653_v36 = vadd.f32 %v652_v35, %v580_v1  ;;  %v838_v37 = vpop.f32.mrb[7].mxu1 }
 0x2ee   : > { %v656_v38 = vmax.f32 %v653_v36, 0.0 }
 0x2f0   : > { %657 = vst [vmem:[%s222_s14] sm:$0xff] %v656_v38 }
 0x2f1 PF: > { %s15_s18 = sadd.s32 1, %s940_s18  }
 0x2f2   : > { %p12_p4 = scmp.ge.s32.totalorder %s15_s18, 4  }
 0x2f4   :  { %14 = sbr.rel (!%p12_p4) target bundleno = 1 (0x1), region = 73 }

</bundles_post_ra>
